<compile_context>
chip_gen: v7x
topology: tpu7x:2x2x1
jax: 0.10.0
libtpu: 0.0.40
codegen_flags: <defaults>
</compile_context>

<pallas_src>
import functools

import jax
import jax.numpy as jnp
from jax.experimental import pallas as pl
from jax.experimental.pallas import tpu as pltpu


def _distill_kl_kernel(ys_ref, yt_ref, o_ref, *, inv_t, scale, batch, batch_tile):
    core = pl.program_id(0)
    step = pl.program_id(1)
    steps = pl.num_programs(1)

    @pl.when(step == 0)
    def _():
        o_ref[...] = jnp.zeros_like(o_ref)

    # Upcast once; all math in f32.  (2 exps/element is the EUP floor; kept in
    # f32 for accuracy -- on v7x with bf16 inputs a bf16 exp path would relieve
    # EUP pressure if ~1e-3 relative error is acceptable.)
    ys = ys_ref[...].astype(jnp.float32) * inv_t
    yt = yt_ref[...].astype(jnp.float32) * inv_t

    ys_sh = ys - jnp.max(ys, axis=-1, keepdims=True)
    yt_sh = yt - jnp.max(yt, axis=-1, keepdims=True)

    # Algebraic form of sum_j p_t * (log p_t - log p_s) using sum_j p_t == 1:
    #   KL_row = (1/s_t) * sum_j e_t * (yt_sh - ys_sh) + log(s_s) - log(s_t)
    s_s = jnp.sum(jnp.exp(ys_sh), axis=-1, keepdims=True)          # (bt, 1)
    e_t = jnp.exp(yt_sh)
    s_t = jnp.sum(e_t, axis=-1, keepdims=True)                     # (bt, 1)
    num = jnp.sum(e_t * (yt_sh - ys_sh), axis=-1, keepdims=True)   # (bt, 1)
    kl_row = num / s_t + (jnp.log(s_s) - jnp.log(s_t))             # (bt, 1)

    # In-kernel batch-tail masking (replaces wrapper-side jnp.pad): rows past
    # the true batch -- the partial last block, or fully-clamped duplicate
    # blocks when nblocks % num_cores != 0 -- contribute exactly 0.  Even NaN
    # garbage in padded rows is discarded by the select.
    row0 = (core * steps + step) * batch_tile
    row_ids = row0 + jax.lax.broadcasted_iota(jnp.int32, kl_row.shape, 0)
    kl_row = jnp.where(row_ids < batch, kl_row, 0.0)

    # Accumulate the per-step partial directly in the resident output block.
    o_ref[...] += jnp.sum(kl_row)

    @pl.when(step == steps - 1)
    def _():
        o_ref[...] = o_ref[...] * scale


def _round_up(x, m):
    return ((x + m - 1) // m) * m


def _device_vmem_and_cores():
    """(scoped-VMEM limit in bytes, TensorCores per chip) for the default device."""
    kind = ""
    try:
        kind = jax.devices()[0].device_kind.lower()
    except Exception:
        pass
    is_v7 = "v7" in kind
    num_cores = 2 if is_v7 else 1                 # v7x: 2 TCs/chip; v5e/v6e: 1
    if is_v7:
        vmem_limit = 48 * 1024 * 1024             # 64 MiB physical per TC
    elif any(v in kind for v in ("v4", "v5", "v6")):
        vmem_limit = 64 * 1024 * 1024             # 128 MiB physical per TC
    else:
        vmem_limit = 32 * 1024 * 1024             # conservative fallback
    try:
        # Prefer the runtime query when available (never exceed 3/4 of physical).
        vmem_limit = min(vmem_limit,
                         (int(pltpu.get_tpu_info().vmem_capacity_bytes) * 3) // 4)
    except Exception:
        pass
    return vmem_limit, num_cores


def distill_kl(y_s, y_t, T, *, batch_tile=None, num_cores=None, vmem_limit_bytes=None):
    """Pallas implementation of DistillKL.forward. Returns a scalar f32.

    y_s / y_t may be f32 or bf16 (bf16 recommended for HBM bandwidth); the
    kernel upcasts to f32 internally.
    """
    assert y_s.shape == y_t.shape and y_s.ndim == 2
    B, C = y_s.shape

    # Sublane tile must satisfy BOTH input dtypes (8 rows for 32-bit, 16 for
    # 16-bit, 32 for 8-bit).
    def _sub(dt):
        return 8 * max(1, 4 // jnp.dtype(dt).itemsize)

    sub = max(_sub(y_s.dtype), _sub(y_t.dtype))

    auto_vmem, auto_cores = _device_vmem_and_cores()
    if vmem_limit_bytes is None:
        vmem_limit_bytes = auto_vmem
    if num_cores is None:
        num_cores = auto_cores

    if batch_tile is None:
        # Size blocks from the VMEM budget: 2 pipeline buffers per input plus
        # ~5 block-sized f32 temporaries must fit in ~75% of the scoped limit.
        its = jnp.dtype(y_s.dtype).itemsize
        itt = jnp.dtype(y_t.dtype).itemsize
        bytes_per_row = 2 * C * (its + itt) + 20 * C
        rows_vmem = max(sub, (3 * vmem_limit_bytes // 4) // bytes_per_row)
        # Keep ~4 pipelined steps per core so the DMA stays overlapped, but do
        # not shrink below that (per-step overhead ~0.35 us).
        rows_pipe = pl.cdiv(B, 4 * num_cores)
        batch_tile = max(sub, _round_up(min(rows_vmem, rows_pipe), sub))
    else:
        batch_tile = max(sub, _round_up(batch_tile, sub))

    nblocks = pl.cdiv(B, batch_tile)           # partial last block allowed
    num_cores = max(1, min(num_cores, nblocks))
    steps = pl.cdiv(nblocks, num_cores)

    def in_map(c, i):
        # Clamp so the DMA never indexes past the last block; out-of-range
        # logical blocks are masked to exactly zero inside the kernel.
        return (jnp.minimum(c * steps + i, nblocks - 1), 0)

    kernel = functools.partial(
        _distill_kl_kernel,
        inv_t=float(1.0 / T),                  # Python floats -> immediates
        scale=float(T) * float(T) / float(B),
        batch=B,
        batch_tile=batch_tile,
    )

    out = pl.pallas_call(
        kernel,
        out_shape=jax.ShapeDtypeStruct((num_cores, 1, 1), jnp.float32),
        grid_spec=pltpu.PrefetchScalarGridSpec(
            num_scalar_prefetch=0,
            grid=(num_cores, steps),
            in_specs=[
                pl.BlockSpec((batch_tile, C), in_map),
                pl.BlockSpec((batch_tile, C), in_map),
            ],
            out_specs=pl.BlockSpec((1, 1, 1), lambda c, i: (c, 0, 0)),
        ),
        compiler_params=pltpu.CompilerParams(
            # core axis is parallel (v7x megacore); reduction axis is not.
            dimension_semantics=("parallel", "arbitrary"),
            vmem_limit_bytes=int(vmem_limit_bytes),
        ),
    )(y_s, y_t)
    # Per-core partials already carry the T^2 / B scale; just sum them.
    return jnp.sum(out)


def distill_kl_ref(y_s, y_t, T):
    """Plain-JAX reference matching the PyTorch module."""
    y_s = y_s.astype(jnp.float32)
    y_t = y_t.astype(jnp.float32)
    log_p_s = jax.nn.log_softmax(y_s / T, axis=1)
    log_p_t = jax.nn.log_softmax(y_t / T, axis=1)
    p_t = jnp.exp(log_p_t)
    return jnp.sum(p_t * (log_p_t - log_p_s)) * (T ** 2) / y_s.shape[0]


if __name__ == "__main__":
    T = 4.0
    # Small logits [batch, num_classes]; B deliberately not a tile multiple so
    # the in-kernel batch-tail masking path is exercised.
    B, C = 13, 32

    key = jax.random.PRNGKey(0)
    k_s, k_t = jax.random.split(key)
    y_s = jax.random.normal(k_s, (B, C), dtype=jnp.float32)
    y_t = jax.random.normal(k_t, (B, C), dtype=jnp.float32)

    loss = jax.block_until_ready(distill_kl(y_s, y_t, T))
    ref = jax.block_until_ready(distill_kl_ref(y_s, y_t, T))

    assert jnp.allclose(loss, ref, rtol=1e-4, atol=1e-6), (loss, ref)
    print("KERNEL_OK")
</pallas_src>

<mosaic_0001>
module attributes {stable_mosaic.version = 11 : i64} {
  func.func @_distill_kl_kernel(%arg0: i32, %arg1: i32, %arg2: memref<8x32xf32, #tpu.memory_space<vmem>>, %arg3: memref<8x32xf32, #tpu.memory_space<vmem>>, %arg4: memref<1x1x1xf32, #tpu.memory_space<vmem>>) attributes {dimension_semantics = [#tpu.dimension_semantics<parallel>, #tpu.dimension_semantics<arbitrary>], iteration_bounds = array<i64: 1, 2>, scalar_prefetch = 0 : i64, scratch_operands = 0 : i64, tpu.core_type = #tpu.core_type<tc>, window_params = [{transform_indices = @transform_0, window_bounds = array<i64: 8, 32>}, {transform_indices = @transform_1, window_bounds = array<i64: 8, 32>}, {transform_indices = @transform_2, window_bounds = array<i64: 1, 1, 1>}]} {
    %c0_i32 = arith.constant 0 : i32
    %0 = arith.cmpi eq, %arg1, %c0_i32 : i32
    %1 = arith.extui %0 : i1 to i32
    %c0_i32_0 = arith.constant 0 : i32
    %2 = arith.cmpi ne, %1, %c0_i32_0 : i32
    scf.if %2 {
      %cst_19 = arith.constant 0.000000e+00 : f32
      %53 = vector.broadcast %cst_19 : f32 to vector<1x1x1xf32>
      %c0_20 = arith.constant 0 : index
      %c0_21 = arith.constant 0 : index
      %c0_22 = arith.constant 0 : index
      %54 = vector.load %arg4[%c0_20, %c0_21, %c0_22] : memref<1x1x1xf32, #tpu.memory_space<vmem>>, vector<1x1x1xf32>
      tpu.vector_store %arg4[%c0_20, %c0_21, %c0_22], %53 {strides = array<i32>} : memref<1x1x1xf32, #tpu.memory_space<vmem>>, vector<1x1x1xf32>,
    } else {
    }
    %c0 = arith.constant 0 : index
    %c0_1 = arith.constant 0 : index
    %3 = vector.load %arg2[%c0, %c0_1] : memref<8x32xf32, #tpu.memory_space<vmem>>, vector<8x32xf32>
    %cst = arith.constant 2.500000e-01 : f32
    %4 = vector.broadcast %cst : f32 to vector<8x32xf32>
    %5 = arith.mulf %3, %4 : vector<8x32xf32>
    %c0_2 = arith.constant 0 : index
    %c0_3 = arith.constant 0 : index
    %6 = vector.load %arg3[%c0_2, %c0_3] : memref<8x32xf32, #tpu.memory_space<vmem>>, vector<8x32xf32>
    %cst_4 = arith.constant 2.500000e-01 : f32
    %7 = vector.broadcast %cst_4 : f32 to vector<8x32xf32>
    %8 = arith.mulf %6, %7 : vector<8x32xf32>
    %cst_5 = arith.constant dense<0xFF800000> : vector<8xf32>
    %9 = vector.multi_reduction <maximumf>, %5, %cst_5 [1] : vector<8x32xf32> to vector<8xf32>
    %10 = vector.shape_cast %9 : vector<8xf32> to vector<8x1xf32>
    %11 = vector.broadcast %10 : vector<8x1xf32> to vector<8x32xf32>
    %12 = arith.subf %5, %11 : vector<8x32xf32>
    %cst_6 = arith.constant dense<0xFF800000> : vector<8xf32>
    %13 = vector.multi_reduction <maximumf>, %8, %cst_6 [1] : vector<8x32xf32> to vector<8xf32>
    %14 = vector.shape_cast %13 : vector<8xf32> to vector<8x1xf32>
    %15 = vector.broadcast %14 : vector<8x1xf32> to vector<8x32xf32>
    %16 = arith.subf %8, %15 : vector<8x32xf32>
    %17 = math.exp %12 : vector<8x32xf32>
    %cst_7 = arith.constant dense<0.000000e+00> : vector<8xf32>
    %18 = vector.multi_reduction <add>, %17, %cst_7 [1] : vector<8x32xf32> to vector<8xf32>
    %19 = vector.shape_cast %18 : vector<8xf32> to vector<8x1xf32>
    %20 = math.exp %16 : vector<8x32xf32>
    %cst_8 = arith.constant dense<0.000000e+00> : vector<8xf32>
    %21 = vector.multi_reduction <add>, %20, %cst_8 [1] : vector<8x32xf32> to vector<8xf32>
    %22 = vector.shape_cast %21 : vector<8xf32> to vector<8x1xf32>
    %23 = arith.subf %16, %12 : vector<8x32xf32>
    %24 = arith.mulf %20, %23 : vector<8x32xf32>
    %cst_9 = arith.constant dense<0.000000e+00> : vector<8xf32>
    %25 = vector.multi_reduction <add>, %24, %cst_9 [1] : vector<8x32xf32> to vector<8xf32>
    %26 = vector.shape_cast %25 : vector<8xf32> to vector<8x1xf32>
    %27 = arith.divf %26, %22 : vector<8x1xf32>
    %28 = math.log %19 : vector<8x1xf32>
    %29 = math.log %22 : vector<8x1xf32>
    %30 = arith.subf %28, %29 : vector<8x1xf32>
    %31 = arith.addf %27, %30 : vector<8x1xf32>
    %c2_i32 = arith.constant 2 : i32
    %32 = arith.muli %arg0, %c2_i32 : i32
    %33 = arith.addi %32, %arg1 : i32
    %c8_i32 = arith.constant 8 : i32
    %34 = arith.muli %33, %c8_i32 : i32
    %35 = tpu.iota {dimensions = array<i32: 0>} : vector<8x1xi32>
    %36 = vector.broadcast %34 : i32 to vector<8x1xi32>
    %37 = arith.addi %36, %35 : vector<8x1xi32>
    %c13_i32 = arith.constant 13 : i32
    %38 = vector.broadcast %c13_i32 : i32 to vector<8x1xi32>
    %39 = arith.cmpi slt, %37, %38 : vector<8x1xi32>
    %cst_10 = arith.constant 0.000000e+00 : f32
    %40 = vector.broadcast %cst_10 : f32 to vector<8x1xf32>
    %41 = arith.select %39, %31, %40 : vector<8x1xi1>, vector<8x1xf32>
    %c0_11 = arith.constant 0 : index
    %c0_12 = arith.constant 0 : index
    %c0_13 = arith.constant 0 : index
    %42 = vector.load %arg4[%c0_11, %c0_12, %c0_13] : memref<1x1x1xf32, #tpu.memory_space<vmem>>, vector<1x1x1xf32>
    %43 = vector.shape_cast %41 : vector<8x1xf32> to vector<1x8x1xf32>
    %cst_14 = arith.constant dense<0.000000e+00> : vector<1xf32>
    %44 = vector.multi_reduction <add>, %43, %cst_14 [1, 2] : vector<1x8x1xf32> to vector<1xf32>
    %45 = vector.shape_cast %44 : vector<1xf32> to vector<1x1x1xf32>
    %46 = vector.extract %45[0, 0, 0] : f32 from vector<1x1x1xf32>
    %47 = vector.broadcast %46 : f32 to vector<1x1x1xf32>
    %48 = arith.addf %42, %47 : vector<1x1x1xf32>
    %c0_15 = arith.constant 0 : index
    %c0_16 = arith.constant 0 : index
    %c0_17 = arith.constant 0 : index
    %49 = vector.load %arg4[%c0_15, %c0_16, %c0_17] : memref<1x1x1xf32, #tpu.memory_space<vmem>>, vector<1x1x1xf32>
    tpu.vector_store %arg4[%c0_15, %c0_16, %c0_17], %48 {strides = array<i32>} : memref<1x1x1xf32, #tpu.memory_space<vmem>>, vector<1x1x1xf32>,
    %c1_i32 = arith.constant 1 : i32
    %50 = arith.cmpi eq, %arg1, %c1_i32 : i32
    %51 = arith.extui %50 : i1 to i32
    %c0_i32_18 = arith.constant 0 : i32
    %52 = arith.cmpi ne, %51, %c0_i32_18 : i32
    scf.if %52 {
      %c0_19 = arith.constant 0 : index
      %c0_20 = arith.constant 0 : index
      %c0_21 = arith.constant 0 : index
      %53 = vector.load %arg4[%c0_19, %c0_20, %c0_21] : memref<1x1x1xf32, #tpu.memory_space<vmem>>, vector<1x1x1xf32>
      %cst_22 = arith.constant 1.23076928 : f32
      %54 = vector.broadcast %cst_22 : f32 to vector<1x1x1xf32>
      %55 = arith.mulf %53, %54 : vector<1x1x1xf32>
      %c0_23 = arith.constant 0 : index
      %c0_24 = arith.constant 0 : index
      %c0_25 = arith.constant 0 : index
      %56 = vector.load %arg4[%c0_23, %c0_24, %c0_25] : memref<1x1x1xf32, #tpu.memory_space<vmem>>, vector<1x1x1xf32>
      tpu.vector_store %arg4[%c0_23, %c0_24, %c0_25], %55 {strides = array<i32>} : memref<1x1x1xf32, #tpu.memory_space<vmem>>, vector<1x1x1xf32>,
    } else {
    }
    return
  }
  func.func @transform_0(%arg0: i32, %arg1: i32) -> (i32, i32) {
    %c2_i32 = arith.constant 2 : i32
    %0 = arith.muli %arg0, %c2_i32 : i32
    %1 = arith.addi %0, %arg1 : i32
    %c1_i32 = arith.constant 1 : i32
    %2 = arith.minsi %1, %c1_i32 : i32
    %c0_i32 = arith.constant 0 : i32
    %c0_i32_0 = arith.constant 0 : i32
    return %2, %c0_i32 : i32, i32
  }
  func.func @transform_1(%arg0: i32, %arg1: i32) -> (i32, i32) {
    %c2_i32 = arith.constant 2 : i32
    %0 = arith.muli %arg0, %c2_i32 : i32
    %1 = arith.addi %0, %arg1 : i32
    %c1_i32 = arith.constant 1 : i32
    %2 = arith.minsi %1, %c1_i32 : i32
    %c0_i32 = arith.constant 0 : i32
    %c0_i32_0 = arith.constant 0 : i32
    return %2, %c0_i32 : i32, i32
  }
  func.func @transform_2(%arg0: i32, %arg1: i32) -> (i32, i32, i32) {
    %c0_i32 = arith.constant 0 : i32
    %c0_i32_0 = arith.constant 0 : i32
    %c0_i32_1 = arith.constant 0 : i32
    return %arg0, %c0_i32, %c0_i32_0 : i32, i32, i32
  }
}

</mosaic_0001>

<bundles_post_ra>
// kernel: tpu_custom_call.1
= control target key start
LH: loop header
LB: loop body
LE: loop exit
PB: predicated region body
PF: predicated region fallthrough
CT: control target
= control target key end

     0   :  { %7 = vsyncpa [#allocation3], 0  ;;  %s866_s0 = inlined_call_operand.hbm [shape: f32[13,32], index: 0, kind: input, shape index: {}]   ;;  %s867_s1 = inlined_call_operand.hbm [shape: f32[13,32], index: 1, kind: input, shape index: {}]   ;;  %s868_s2 = inlined_call_operand.hbm [shape: f32[1,1,1], index: 2, kind: output, shape index: {}]  }
   0x1   :  { %9 = vsyncpa [#allocation3 + $0x1], 0 }
   0x2   :  { %10 = vsyncpa [#allocation6], 0 }
   0x3   :  { %12 = vsyncpa [#allocation6 + $0x1], 0 }
   0x4   :  { %13 = vsyncpa [#allocation4], 0  ;;  %s662_s9 = smov 0   ;;  %s664_s10 = smov 0  }
   0x5   :  { %s666_s11 = smov 0   ;;  %s668_s12 = smov 0  }
   0x6   :  { %s670_s13 = smov 0   ;;  %s672_s14 = smov 0  }
   0x7 LB: > { %s400_s15 = sadd.s32 4294967295, %s641_s14   ;;  %s28_s16 = sadd.s32 1, %s637_s13  ;;  %s641_s14 = sphi %s672_s14, %s19_s14   ;;  %s637_s13 = sphi %s670_s13, %s882_s13   ;;  %s633_s12 = sphi %s668_s12, %s881_s12   ;;  %s629_s11 = sphi %s666_s11, %s880_s11   ;;  %s625_s10 = sphi %s664_s10, %s879_s10   ;;  %s621_s9 = sphi %s662_s9, %s878_s9  }
   0x8   : > { %p29_p0 = scmp.ge.s32.totalorder %s28_s16, 2  ;;  %p37_p1 = scmp.lt.s32.totalorder %s637_s13, 1 }
   0x9   : > { %s46_s17 = sadd.s32 1, %s629_s11  ;;  %p53_p2 = scmp.ne.s32.totalorder %s629_s11, %s625_s10 }
   0xa   : > { %s884_s16 = smov (%p29_p0, %s28_s16), 0  ;;  %p54_p4 = scmp.eq.s32.totalorder %s641_s14, 0 }
   0xb   : > { %s699_s18 = scalar_select %p37_p1, %s637_s13, 1 }
   0xc   : > { %p41_p3 = scmp.lt.s32.totalorder %s884_s16, 1  ;;  %p59_p5 = scmp.ne.s32.totalorder %s625_s10, %s621_s9 }
   0xd   : > { %p60_p6 = scmp.eq.s32.totalorder %s400_s15, 0  ;;  %p55_p7 = por %p54_p4, %p53_p2 }
   0xe   : > { %s42_s19 = scalar_select %p41_p3, %s884_s16, 1 }
   0xf   : > { %p707_p8 = por %p60_p6, %p59_p5  ;;  %p434_p10 = scmp.lt.s32.totalorder %s641_s14, 2 }
  0x10   : > { %s43_s21 = ssub.s32 %s699_s18, %s42_s19  ;;  %s714_s22 = sand.u32 1, %s629_s11  }
  0x11   : > { %s870_s20 = scalar_select %p707_p8, 1, 0 }
  0x12   : > { %p44_p9 = scmp.eq.s32.totalorder %s43_s21, 0  ;;  %s404_s23 = sshll.u32 %s699_s18, 7 }
  0x13   : > { %s403_s25 = sshll.u32 %s714_s22, 3  ;;  %s726_s28 = scalar_lea.hbm %s866_s0, %s404_s23 }
  0x14   : > { %s718_s24 = scalar_select %p44_p9, %s629_s11, %s46_s17  }
  0x15   : > { %s147_s29 = scalar_lea.vmem [#allocation2], %s403_s25  ;;  %p730_p11 = pnand %p434_p10, %p55_p7 }
  0x16   : > { %s158_s30 = sshll.u32 %s147_s29, 4  ;;  %s144_s4 = scalar_lea.sflag [#allocation3], %s714_s22  ;;  %s734_s30 = int_to_ptr.vmem [resolvable:$true] %s158_s30 }
  0x17   : > { %s497_s5 = scalar_lea.hbm %s726_s28, 128  ;;  %p499_p1 = pneg %p730_p11 }
  0x18   : > { %p498_p0 = scmp.ne.s32.totalorder %s726_s28, %s497_s5  ;;  %s502_s8 = scalar_lea.hbm %s866_s0, 256 }
  0x19   : > { %p503_p4 = scmp.lt.u32.totalorder %s726_s28, %s866_s0  ;;  %p504_p5 = scmp.lt.u32.totalorder %s502_s8, %s497_s5 }
  0x1a   : > { %p500_p2 = pnand %p499_p1, %p498_p0  ;;  %p506_p7 = scmp.lt.u32.totalorder %s497_s5, %s726_s28 }
  0x1b   : > { %p505_p6 = por %p504_p5, %p503_p4 }
  0x1c   : > { %p501_p3 = pneg %p500_p2 }
  0x1d   : > { %p507_p9 = por %p506_p7, %p505_p6 }
  0x1f   : > { %p508_p10 = pnand %p507_p9, %p501_p3 }
  0x21   : > { %511 = shalt.err (!%p508_p10)
}
  0x22   : > { %s512_s19 = scalar_lea.vmem %s734_s30, 128  ;;  %s643_s21 = smov [#allocation2]  }
  0x23   : > { %p513_p0 = scmp.ne.s32.totalorder %s734_s30, %s512_s19  ;;  %s517_s26 = sshll.u32 %s643_s21, 4  ;;  %s518_s26 = int_to_ptr.vmem [resolvable:$false] %s517_s26 }
  0x24   : > { %s519_s27 = scalar_lea.vmem %s518_s26, 256  ;;  %p520_p13 = scmp.lt.s32.totalorder %s734_s30, %s518_s26 }
  0x25   : > { %p515_p2 = pnand %p513_p0, %p499_p1  ;;  %p521_p4 = scmp.lt.s32.totalorder %s519_s27, %s512_s19 }
  0x27   : > { %p516_p12 = pneg %p515_p2  ;;  %p522_p5 = por %p521_p4, %p520_p13 }
  0x29   : > { %p523_p6 = pnand %p522_p5, %p516_p12 }
  0x2b   : > { %526 = shalt.err (!%p523_p6)
}
  0x2c   : > { %430 = dma.hbm_to_vmem [thread:$0]  (!%p730_p11), %s726_s28, 128, %s734_s30, %s144_s4  }
  0x2d   : > { %p872_p3 = scmp.lt.s32.totalorder %s641_s14, 3  ;;  %p873_p7 = scmp.ge.s32.totalorder %s641_s14, 1 }
  0x2e   : > { %s777_s7 = scalar_lea.hbm %s867_s1, %s404_s23  ;;  %s169_s8 = scalar_lea.vmem [#allocation5], %s403_s25 }
  0x2f   : > { %p768_p9 = pnand %p873_p7, %p872_p3  ;;  %s180_s9 = sshll.u32 %s169_s8, 4  ;;  %s181_s9 = int_to_ptr.vmem [resolvable:$true] %s180_s9 }
  0x30   : > { %s166_s28 = scalar_lea.sflag [#allocation6], %s714_s22  ;;  %s527_s30 = scalar_lea.hbm %s777_s7, 128 }
  0x31   : > { %s874_s29 = scalar_select %p768_p9, 1, 0 }
  0x32   : > { %p528_p12 = scmp.ne.s32.totalorder %s777_s7, %s527_s30  ;;  %s532_s23 = scalar_lea.hbm %s867_s1, 256 }
  0x33   : > { %p533_p0 = scmp.lt.u32.totalorder %s777_s7, %s867_s1  ;;  %p534_p2 = scmp.lt.u32.totalorder %s532_s23, %s527_s30 }
  0x34   : > { %p530_p13 = pnand %p528_p12, %p499_p1  ;;  %p536_p5 = scmp.lt.u32.totalorder %s527_s30, %s777_s7 }
  0x35   : > { %p535_p4 = por %p534_p2, %p533_p0 }
  0x36   : > { %p531_p10 = pneg %p530_p13 }
  0x37   : > { %p537_p6 = por %p536_p5, %p535_p4 }
  0x39   : > { %p538_p3 = pnand %p537_p6, %p531_p10 }
  0x3b   : > { %541 = shalt.err (!%p538_p3)
}
  0x3c   : > { %s542_s22 = scalar_lea.vmem %s181_s9, 128  ;;  %s644_s25 = smov [#allocation5]  }
  0x3d   : > { %p543_p7 = scmp.ne.s32.totalorder %s181_s9, %s542_s22  ;;  %s547_s21 = sshll.u32 %s644_s25, 4  ;;  %s548_s21 = int_to_ptr.vmem [resolvable:$false] %s547_s21 }
  0x3e   : > { %s549_s26 = scalar_lea.vmem %s548_s21, 256  ;;  %p550_p8 = scmp.lt.s32.totalorder %s181_s9, %s548_s21 }
  0x3f   : > { %p545_p12 = pnand %p543_p7, %p499_p1  ;;  %p551_p9 = scmp.lt.s32.totalorder %s549_s26, %s542_s22 }
  0x41   : > { %p546_p13 = pneg %p545_p12  ;;  %p552_p0 = por %p551_p9, %p550_p8 }
  0x43   : > { %p553_p2 = pnand %p552_p0, %p546_p13 }
  0x45   : > { %556 = shalt.err (!%p553_p2)
}
  0x46   : > { %433 = dma.hbm_to_vmem [thread:$0]  (!%p730_p11), %s777_s7, 128, %s181_s9, %s166_s28  }
  0x47   : > { %p875_p10 = scmp.ne.s32.totalorder %s874_s29, 0 }
  0x48   : > { %s191_s27 = sand.u32 (!%p875_p10), 1, %s625_s10   ;;  %p876_p1 = scmp.ne.s32.totalorder (!%p875_p10), %s870_s20, 0 }
  0x49   : > { %189 = sbr.rel (%p875_p10) target bundleno = 663 (0x297), region = 28  ;;  %s408_s5 = sshll.u32 (!%p875_p10), %s191_s27, 3 }
  0x4a   : > { %s192_s6 = scalar_lea.sflag (!%p875_p10), [#allocation3], %s191_s27  ;;  %s195_s8 = scalar_lea.vmem (!%p875_p10), [#allocation2], %s408_s5 }
  0x50   : > { %608 = dma.done.wait (%p876_p1), %s192_s6, 128  }
  0x51   : > { %610 = vsyncadd (%p876_p1), %s192_s6, 4294967168  ;;  %s201_s30 = scalar_lea.sflag [#allocation6], %s191_s27  ;;  %s204_s18 = scalar_lea.vmem [#allocation5], %s408_s5 }
  0x52   : > { %612 = dma.done.wait (%p876_p1), %s201_s30, 128  }
  0x53   : > { %614 = vsyncadd (%p876_p1), %s201_s30, 4294967168  ;;  %p410_p8 = scmp.ne.s32.totalorder %s633_s12, 0 }
  0x54   : > { %vm237_vm0 = vcmask (!%p410_p8), 0   ;;  %v645_v0 = vmov (!%p410_p8), 0.0  }
  0x55   : > { %236 = sbr.rel (%p410_p8) target bundleno = 92 (0x5c), region = 40  ;;  %238 = vst.msk [vmem:[#allocation7] sm:$0x1] (!%p410_p8), %vm237_vm0, %v645_v0 }
  0x5c PF: > { %v239_v1 = vld [vmem:[%s195_s8] sm:$0xff]  ;;  %vm243_vm1 = vcmask 261120   ;;  %v241_v2 = vld [vmem:[%s204_s18] sm:$0xff]  ;;  %v278_v22 = vlaneseq  ;;  %s411_s20 = sshll.u32 %s633_s12, 3  ;;  %vm285_vm3 = vcmask 7168   ;;  %vm298_vm4 = vcmask 0  }
  0x5d   : > { %v240_v3 = vmul.f32 0.25, %v239_v1  ;;  %v242_v4 = vmul.f32 0.25, %v241_v2  ;;  %v280_v24 = vstv %s411_s20  ;;  %v284_v44 = vld [vmem:[#allocation7] sm:$0x1]  ;;  %p412_p11 = scmp.ne.s32.totalorder %s633_s12, 1 }
  0x5e   : > { %v279_v23 = vshrl.u32 %v278_v22, 7 }
  0x5f   : > { %v244_v5 = vsel %vm243_vm1, %v240_v3, -inf  ;;  %v248_v6 = vsel %vm243_vm1, %v242_v4, -inf }
  0x60   : > { %245 = vmax.xlane.f32.xlu0 %v244_v5  ;;  %v281_v28 = vadd.s32 %v280_v24, %v279_v23 }
  0x62   : > { %vm282_vm2 = vcmp.lt.s32.totalorder %v281_v28, 13 }
  0x64   : > { %249 = vmax.xlane.f32.xlu0 %v248_v6 }
  0xed   : > { %v246_v7 = vpop.xlane.xlu0 %245 }
  0xee   : > { %v247_v8 = vsub.f32 %v240_v3, %v246_v7 }
  0xf0   : > { %v252_v9 = vmul.f32 1.442695, %v247_v8 }
  0xf1   : > { %v250_v10 = vpop.xlane.xlu0 %249 }
  0xf2   : > { %487 = vpow2.f32 %v252_v9  ;;  %v251_v11 = vsub.f32 %v242_v4, %v250_v10 }
  0xf4   : > { %v257_v12 = vmul.f32 1.442695, %v251_v11  ;;  %v262_v15 = vsub.f32 %v251_v11, %v247_v8 }
  0xf6   : > { %489 = vpow2.f32 %v257_v12 }
  0xfc   : > { %v488_v13 = vpop.eup %487 }
  0xfd   : > { %v254_v14 = vsel %vm243_vm1, %v488_v13, 0.0 }
  0xfe   : > { %255 = vadd.xlane.f32.xlu1 %v254_v14 }
 0x100   : > { %v490_v16 = vpop.eup %489 }
 0x101   : > { %v259_v17 = vsel %vm243_vm1, %v490_v16, 0.0  ;;  %v263_v18 = vmul.f32 %v490_v16, %v262_v15 }
 0x102   : > { %260 = vadd.xlane.f32.xlu1 %v259_v17 }
 0x103   : > { %v264_v19 = vsel %vm243_vm1, %v263_v18, 0.0 }
 0x104   : > { %265 = vadd.xlane.f32.xlu0 %v264_v19 }
 0x18b   : > { %v256_v20 = vpop.xlane.xlu1 %255 }
 0x18c   : > { %491 = vlog2.f32 %v256_v20 }
 0x18f   : > { %v261_v21 = vpop.xlane.xlu1 %260 }
 0x190   : > { %493 = vrcp.f32 %v261_v21 }
 0x191   : > { %495 = vlog2.f32 %v261_v21  ;;  %v266_v31 = vpop.xlane.xlu0 %265 }
 0x196   : > { %v492_v25 = vpop.eup %491 }
 0x197   : > { %v270_v29 = vmul.f32 0.6931472, %v492_v25 }
 0x19a   : > { %v494_v26 = vpop.eup %493 }
 0x19b   : > { %v496_v27 = vpop.eup %495  ;;  %v268_v32 = vmul.f32 %v494_v26, %v266_v31 }
 0x19c   : > { %v272_v30 = vmul.f32 0.6931472, %v496_v27 }
 0x19e   : > { %v273_v33 = vsub.f32 %v270_v29, %v272_v30 }
 0x1a0   : > { %v274_v34 = vadd.f32 %v273_v33, %v268_v32 }
 0x1a2   : > { %v283_v35 = vsel %vm282_vm2, %v274_v34, 0.0 }
 0x1a3   : > { %v286_v36 = vsel %vm285_vm3, %v283_v35, 0.0 }
 0x1a4   : > { %287 = vadd.xlane.f32.xlu1 %v286_v36 }
 0x231   : > { %v288_v37 = vpop.xlane.xlu1 %287 }
 0x232   : > { %v289_v38 = vrot.slane %v288_v37, 4 }
 0x234   : > { %v290_v39 = vadd.f32 %v289_v38, %v288_v37 }
 0x236   : > { %v291_v40 = vrot.slane %v290_v39, 2 }
 0x238   : > { %v292_v41 = vadd.f32 %v291_v40, %v290_v39 }
 0x23a   : > { %v293_v42 = vrot.slane %v292_v41, 1 }
 0x23c   : > { %v294_v43 = vadd.f32 %v293_v42, %v292_v41 }
 0x23e   : > { %417 = vpush %v294_v43 }
 0x26d   : > { %303 = sbr.rel (%p412_p11) target bundleno = 638 (0x27e), region = 44 }
 0x26f   : > { %s418_s3 = spop %417 }
 0x270   : > { %v296_v45 = vstv %s418_s3 }
 0x271   : > { %v297_v46 = vadd.f32 %v296_v45, %v284_v44 }
 0x273   : > { %299 = vst.msk [vmem:[#allocation7] sm:$0x1] %vm298_vm4, %v297_v46 }
 0x27a   : > { %v304_v47 = vld [vmem:[#allocation7] sm:$0x1] }
 0x27b   : > { %v305_v48 = vmul.f32 1.2307693, %v304_v47 }
 0x27d   : > { %306 = vst.msk [vmem:[#allocation7] sm:$0x1] %vm298_vm4, %v305_v48 }
 0x27e PF: > { %p822_p9 = scmp.eq.s32.totalorder %s400_s15, 1  ;;  %s646_s7 = smov [#allocation7]  }
 0x27f   : > { %s316_s9 = sshll.u32 %s646_s7, 4  ;;  %s317_s9 = int_to_ptr.vmem [resolvable:$true] %s316_s9 }
 0x280   : > { %s557_s28 = scalar_lea.vmem %s317_s9, 16  ;;  %s563_s12 = scalar_lea.vmem %s317_s9, 32 }
 0x281   : > { %p558_p4 = scmp.ne.s32.totalorder %s317_s9, %s557_s28  ;;  %p564_p3 = scmp.lt.s32.totalorder %s317_s9, %s317_s9 }
 0x282   : > { %p565_p7 = scmp.lt.s32.totalorder %s563_s12, %s557_s28 }
 0x283   : > { %p559_p5 = pnand %p558_p4, %p822_p9 }
 0x284   : > { %p566_p12 = por %p565_p7, %p564_p3 }
 0x285   : > { %p560_p6 = pneg %p559_p5 }
 0x287   : > { %p567_p13 = pnand %p566_p12, %p560_p6 }
 0x289   : > { %570 = shalt.err (!%p567_p13)
}
 0x28a   : > { %s571_s23 = scalar_lea.hbm %s868_s2, 16 }
 0x28b   : > { %p572_p0 = scmp.ne.s32.totalorder %s868_s2, %s571_s23  ;;  %p577_p1 = scmp.lt.u32.totalorder %s571_s23, %s868_s2 }
 0x28d   : > { %p573_p2 = pnand %p572_p0, %p822_p9 }
 0x28f   : > { %p574_p10 = pneg %p573_p2 }
 0x291   : > { %p579_p8 = pnand %p577_p1, %p574_p10 }
 0x293   : > { %582 = shalt.err (!%p579_p8)
}
 0x294   : > { %424 = dma.vmem_to_hbm [thread:$0]  (%p822_p9), %s317_s9, 16, %s868_s2, [#allocation4]  }
 0x295   : > { %616 = dma.done.wait (%p822_p9), [#allocation4], 16  }
 0x296   : > { %618 = vsyncadd (%p822_p9), [#allocation4], 4294967280 }
 0x297 PF: > { %s19_s14 = sadd.s32 1, %s641_s14   ;;  %s878_s9 = smov %s625_s10 }
 0x298   : > { %p16_p11 = scmp.ge.s32.totalorder %s19_s14, 4   ;;  %s879_s10 = smov %s629_s11 }
 0x299   : > { %s880_s11 = smov %s718_s24  ;;  %s881_s12 = smov %s637_s13 }
 0x29a   : > { %s882_s13 = smov %s884_s16  ;;  %18 = sbr.rel (!%p16_p11) target bundleno = 7 (0x7), region = 87 }
 0x2a1   :  { %329 = vsyncpa [#allocation3], 1 }
 0x2a2   :  { %331 = vsyncpa [#allocation3 + $0x1], 1 }
 0x2a3   :  { %332 = vsyncpa [#allocation6], 1 }
 0x2a4   :  { %334 = vsyncpa [#allocation6 + $0x1], 1 }
 0x2a5   :  { %335 = vsyncpa [#allocation4], 1 }
 0x2a6   :  { %337 = vsyncpa [#allocation4 + $0x1], 1 }

</bundles_post_ra>
